<compile_context>
chip_gen: v6e
topology: v6e:2x2x1
jax: 0.10.0
libtpu: 0.0.40
codegen_flags: <defaults>
</compile_context>

<pallas_src>
import functools

import jax
import jax.numpy as jnp
from jax.experimental import pallas as pl
from jax.experimental.pallas import tpu as pltpu


def _tv_partial_kernel(x_ref, out_ref, *, height, width,
                       inv_count_h, inv_count_w):
    """One (batch, channel-group) block -> one pre-scaled (1, W) partial row."""
    x = x_ref[0]  # (CB, H, W), kept in the input dtype (bf16 stays bf16).
    f32 = jnp.float32

    # ---- vertical differences x[h+1, :] - x[h, :] ---------------------------
    if height > 1:
        dh = (x[:, 1:, :] - x[:, : height - 1, :]).astype(f32)  # (CB, H-1, W)
        h_row = jnp.sum(jnp.sum(dh * dh, axis=0), axis=0, keepdims=True)  # (1, W)
    else:
        h_row = jnp.zeros((1, width), f32)

    # ---- horizontal differences x[:, w+1] - x[:, w] -------------------------
    # Reduce to a scalar (one cheap cross-lane reduce per ~MiB block) and park
    # it in lane 0 of the output row.
    if width > 1:
        dw = (x[:, :, 1:] - x[:, :, : width - 1]).astype(f32)   # (CB, H, W-1)
        w_sum = jnp.sum(dw * dw)
    else:
        w_sum = jnp.float32(0.0)
    lane = jax.lax.broadcasted_iota(jnp.int32, (1, width), 1)
    w_row = jnp.where(lane == 0, w_sum, 0.0)

    # Pre-scale by 1/count_{h,w}.  The inv factors are inf when the count is 0
    # so H == 1 / W == 1 reproduce the PyTorch reference's 0/0 -> NaN contract.
    out_ref[0, 0] = h_row * inv_count_h + w_row * inv_count_w


def _pick_channel_block(B, C, H, W, itemsize, target_bytes=2 << 20):
    """Largest channel-group size whose input block is <= ~2 MiB."""
    per_channel = H * W * itemsize
    divisors = [d for d in range(1, C + 1) if C % d == 0]
    fitting = [d for d in divisors if d * per_channel <= target_bytes]
    cb = max(fitting) if fitting else 1
    # Keep at least ~4 grid steps (when possible) so v7x's two TensorCores
    # both get work; harmless on single-TC v5e/v6e.
    while cb > 1 and B * (C // cb) < 4:
        cb = max(d for d in divisors if d < cb)
    return cb


def tv_loss(x, tv_weight: float = 1.0):
    """Total-variation loss matching TVLoss.forward for NCHW input."""
    B, C, H, W = x.shape
    itemsize = x.dtype.itemsize
    cb = _pick_channel_block(B, C, H, W, itemsize)
    G = C // cb

    count_h = C * (H - 1) * W
    count_w = C * H * (W - 1)
    # NOTE: H == 1 or W == 1 -> 0/0 -> NaN, same as the PyTorch reference.
    inv_count_h = (1.0 / count_h) if count_h > 0 else float("inf")
    inv_count_w = (1.0 / count_w) if count_w > 0 else float("inf")

    kernel = functools.partial(
        _tv_partial_kernel, height=H, width=W,
        inv_count_h=inv_count_h, inv_count_w=inv_count_w)

    # VMEM footprint: double-buffered I/O blocks + in-kernel temporaries
    # (shifted input-dtype copies and f32 squared-diff intermediates), with
    # tile-padded extents.  Always set the scoped limit; clamp to physical
    # VMEM minus headroom (64 MiB on v7x, 128 MiB on v5e/v6e).
    ph = -(-H // 8) * 8
    pw = -(-W // 128) * 128
    in_block = cb * ph * pw * itemsize
    f32_block = cb * ph * pw * 4
    out_block = 8 * pw * 4
    footprint = 2 * in_block + 2 * out_block + 2 * in_block + 3 * f32_block
    phys_vmem = 64 << 20
    try:
        phys_vmem = int(pltpu.get_tpu_info().vmem_capacity_bytes)
    except Exception:
        pass
    vmem_limit = int(min(max(footprint + (4 << 20), 32 << 20),
                         phys_vmem - (8 << 20)))

    cost = pl.CostEstimate(
        flops=6 * B * C * H * W,
        transcendentals=0,
        bytes_accessed=B * C * H * W * itemsize + B * G * W * 4,
    )

    partials = pl.pallas_call(
        kernel,
        out_shape=jax.ShapeDtypeStruct((B, G, 1, W), jnp.float32),
        grid=(B, G),
        in_specs=[pl.BlockSpec((1, cb, H, W), lambda b, g: (b, g, 0, 0))],
        out_specs=pl.BlockSpec((1, 1, 1, W), lambda b, g: (b, g, 0, 0)),
        compiler_params=pltpu.CompilerParams(
            dimension_semantics=("parallel", "parallel"),
            vmem_limit_bytes=vmem_limit,
        ),
        cost_estimate=cost,
    )(x)

    # TODO(synk): if a single channel slab plus its f32 temporaries ever
    # exceeds VMEM (e.g. >4k x 4k f32 per channel on v7x), additionally tile H
    # with a one-row halo; not needed for typical image sizes.

    # Tiny final reduction + weighting in plain JAX (partials are pre-scaled
    # by 1/count_h and 1/count_w inside the kernel).
    return tv_weight * 2.0 * jnp.sum(partials) / B


def tv_loss_ref(x, tv_weight: float = 1.0):
    """Pure-JAX reference mirroring the PyTorch module."""
    x = x.astype(jnp.float32)
    B, C, H, W = x.shape
    count_h = C * (H - 1) * W
    count_w = C * H * (W - 1)
    h_tv = jnp.sum((x[:, :, 1:, :] - x[:, :, : H - 1, :]) ** 2)
    w_tv = jnp.sum((x[:, :, :, 1:] - x[:, :, :, : W - 1]) ** 2)
    return tv_weight * 2.0 * (h_tv / count_h + w_tv / count_w) / B


if __name__ == "__main__":
    key = jax.random.PRNGKey(0)

    # 1) Small unaligned shape (as in the original module usage).
    x1 = jax.random.normal(key, (2, 4, 16, 16), dtype=jnp.float32)
    out1 = jax.block_until_ready(tv_loss(x1, tv_weight=1.0))
    ref1 = tv_loss_ref(x1, tv_weight=1.0)
    assert jnp.allclose(out1, ref1, rtol=1e-4, atol=1e-5), (out1, ref1)

    # 2) Lane-aligned width -> exercises the same channel-packed path with
    #    full 128-lane rows.
    x2 = jax.random.normal(jax.random.fold_in(key, 1), (2, 4, 16, 128),
                           dtype=jnp.float32)
    out2 = jax.block_until_ready(tv_loss(x2, tv_weight=0.5))
    ref2 = tv_loss_ref(x2, tv_weight=0.5)
    assert jnp.allclose(out2, ref2, rtol=1e-4, atol=1e-5), (out2, ref2)

    print("KERNEL_OK")
</pallas_src>

<mosaic_0001>
module attributes {stable_mosaic.version = 11 : i64} {
  func.func @_tv_partial_kernel(%arg0: i32, %arg1: i32, %arg2: memref<1x2x16x16xf32, #tpu.memory_space<vmem>>, %arg3: memref<1x1x1x16xf32, #tpu.memory_space<vmem>>) attributes {dimension_semantics = [#tpu.dimension_semantics<parallel>, #tpu.dimension_semantics<parallel>], iteration_bounds = array<i64: 2, 2>, scalar_prefetch = 0 : i64, scratch_operands = 0 : i64, tpu.core_type = #tpu.core_type<tc>, window_params = [{transform_indices = @transform_0, window_bounds = array<i64: 1, 2, 16, 16>}, {transform_indices = @transform_1, window_bounds = array<i64: 1, 1, 1, 16>}]} {
    %c0 = arith.constant 0 : index
    %c0_0 = arith.constant 0 : index
    %c0_1 = arith.constant 0 : index
    %c0_2 = arith.constant 0 : index
    %0 = vector.load %arg2[%c0, %c0_0, %c0_1, %c0_2] : memref<1x2x16x16xf32, #tpu.memory_space<vmem>>, vector<1x2x16x16xf32>
    %1 = vector.shape_cast %0 : vector<1x2x16x16xf32> to vector<2x16x16xf32>
    %2 = vector.extract_strided_slice %1 {offsets = [0, 1, 0], sizes = [2, 15, 16], strides = [1, 1, 1]} : vector<2x16x16xf32> to vector<2x15x16xf32>
    %3 = vector.extract_strided_slice %1 {offsets = [0, 0, 0], sizes = [2, 15, 16], strides = [1, 1, 1]} : vector<2x16x16xf32> to vector<2x15x16xf32>
    %4 = arith.subf %2, %3 : vector<2x15x16xf32>
    %5 = arith.mulf %4, %4 : vector<2x15x16xf32>
    %cst = arith.constant dense<0.000000e+00> : vector<15x16xf32>
    %6 = vector.multi_reduction <add>, %5, %cst [0] : vector<2x15x16xf32> to vector<15x16xf32>
    %cst_3 = arith.constant dense<0.000000e+00> : vector<16xf32>
    %7 = vector.multi_reduction <add>, %6, %cst_3 [0] : vector<15x16xf32> to vector<16xf32>
    %8 = vector.shape_cast %7 : vector<16xf32> to vector<1x16xf32>
    %9 = vector.extract_strided_slice %1 {offsets = [0, 0, 1], sizes = [2, 16, 15], strides = [1, 1, 1]} : vector<2x16x16xf32> to vector<2x16x15xf32>
    %10 = vector.extract_strided_slice %1 {offsets = [0, 0, 0], sizes = [2, 16, 15], strides = [1, 1, 1]} : vector<2x16x16xf32> to vector<2x16x15xf32>
    %11 = arith.subf %9, %10 : vector<2x16x15xf32>
    %12 = arith.mulf %11, %11 : vector<2x16x15xf32>
    %13 = vector.shape_cast %12 : vector<2x16x15xf32> to vector<1x2x16x15xf32>
    %cst_4 = arith.constant dense<0.000000e+00> : vector<1xf32>
    %14 = vector.multi_reduction <add>, %13, %cst_4 [1, 2, 3] : vector<1x2x16x15xf32> to vector<1xf32>
    %15 = vector.shape_cast %14 : vector<1xf32> to vector<1x1x1x1xf32>
    %16 = vector.extract %15[0, 0, 0, 0] : f32 from vector<1x1x1x1xf32>
    %17 = tpu.iota {dimensions = array<i32: 1>} : vector<1x16xi32>
    %c0_i32 = arith.constant 0 : i32
    %18 = vector.broadcast %c0_i32 : i32 to vector<1x16xi32>
    %19 = arith.cmpi eq, %17, %18 : vector<1x16xi32>
    %cst_5 = arith.constant 0.000000e+00 : f32
    %20 = vector.broadcast %16 : f32 to vector<1x16xf32>
    %21 = vector.broadcast %cst_5 : f32 to vector<1x16xf32>
    %22 = arith.select %19, %20, %21 : vector<1x16xi1>, vector<1x16xf32>
    %cst_6 = arith.constant 0.00104166672 : f32
    %23 = vector.broadcast %cst_6 : f32 to vector<1x16xf32>
    %24 = arith.mulf %8, %23 : vector<1x16xf32>
    %cst_7 = arith.constant 0.00104166672 : f32
    %25 = vector.broadcast %cst_7 : f32 to vector<1x16xf32>
    %26 = arith.mulf %22, %25 : vector<1x16xf32>
    %27 = arith.addf %24, %26 : vector<1x16xf32>
    %c0_8 = arith.constant 0 : index
    %c0_9 = arith.constant 0 : index
    %c0_10 = arith.constant 0 : index
    %c0_11 = arith.constant 0 : index
    %28 = vector.load %arg3[%c0_8, %c0_9, %c0_10, %c0_11] : memref<1x1x1x16xf32, #tpu.memory_space<vmem>>, vector<1x1x1x16xf32>
    %29 = vector.shape_cast %28 : vector<1x1x1x16xf32> to vector<1x16xf32>
    %30 = vector.shape_cast %27 : vector<1x16xf32> to vector<1x1x1x16xf32>
    tpu.vector_store %arg3[%c0_8, %c0_9, %c0_10, %c0_11], %30 {strides = array<i32>} : memref<1x1x1x16xf32, #tpu.memory_space<vmem>>, vector<1x1x1x16xf32>,
    return
  }
  func.func @transform_0(%arg0: i32, %arg1: i32) -> (i32, i32, i32, i32) {
    %c0_i32 = arith.constant 0 : i32
    %c0_i32_0 = arith.constant 0 : i32
    %c0_i32_1 = arith.constant 0 : i32
    return %arg0, %arg1, %c0_i32, %c0_i32_0 : i32, i32, i32, i32
  }
  func.func @transform_1(%arg0: i32, %arg1: i32) -> (i32, i32, i32, i32) {
    %c0_i32 = arith.constant 0 : i32
    %c0_i32_0 = arith.constant 0 : i32
    %c0_i32_1 = arith.constant 0 : i32
    return %arg0, %arg1, %c0_i32, %c0_i32_0 : i32, i32, i32, i32
  }
}

</mosaic_0001>

<bundles_post_ra>
// kernel: tpu_custom_call.1
= control target key start
LH: loop header
LB: loop body
LE: loop exit
PB: predicated region body
PF: predicated region fallthrough
CT: control target
= control target key end

     0   :  { %6 = vsyncpa [#allocation3], 0  ;;  %s762_s0 = inlined_call_operand.hbm [shape: f32[2,4,16,16], index: 0, kind: input, shape index: {}]   ;;  %s763_s1 = inlined_call_operand.hbm [shape: f32[2,2,1,16], index: 1, kind: output, shape index: {}]  }
   0x1   :  { %8 = vsyncpa [#allocation3 + $0x1], 0 }
   0x2   :  { %9 = vsyncpa [#allocation4], 0 }
   0x3   :  { %11 = vsyncpa [#allocation4 + $0x1], 0  ;;  %s609_s6 = smov 0   ;;  %s611_s7 = smov 0  }
   0x4   :  { %s613_s8 = smov 0   ;;  %s615_s9 = smov 0  }
   0x5   :  { %s617_s10 = smov 0   ;;  %s619_s11 = smov 0  }
   0x6   :  { %s621_s12 = smov 0   ;;  %s623_s13 = smov 0  }
   0x7 LB: > { %s367_s14 = sadd.s32 4294967295, %s591_s13   ;;  %s368_s15 = sadd.s32 4294967294, %s591_s13   ;;  %s591_s13 = sphi %s623_s13, %s17_s13   ;;  %s587_s12 = sphi %s621_s12, %s775_s12   ;;  %s583_s11 = sphi %s619_s11, %s774_s11   ;;  %s579_s10 = sphi %s617_s10, %s773_s10   ;;  %s575_s9 = sphi %s615_s9, %s772_s9   ;;  %s571_s8 = sphi %s613_s8, %s771_s8   ;;  %s567_s7 = sphi %s611_s7, %s770_s7   ;;  %s563_s6 = sphi %s609_s6, %s769_s6  }
   0x8   : > { %s26_s16 = sadd.s32 1, %s583_s11  ;;  %s29_s17 = sadd.s32 1, %s587_s12 }
   0x9   : > { %p27_p0 = scmp.ge.s32.totalorder %s26_s16, 2  ;;  %s38_s18 = sadd.s32 1, %s571_s8 }
   0xa   : > { %p45_p1 = scmp.ne.s32.totalorder %s571_s8, %s567_s7  ;;  %p46_p2 = scmp.eq.s32.totalorder %s591_s13, 0 }
   0xb   : > { %s777_s16 = smov (%p27_p0, %s26_s16), 0  ;;  %s779_s17 = smov (!%p27_p0, %s29_s17), %s587_s12 }
   0xc   : > { %s34_s19 = ssub.s32 %s583_s11, %s777_s16  ;;  %p662_p3 = por %p46_p2, %p45_p1 }
   0xd   : > { %p31_p4 = scmp.ge.s32.totalorder %s779_s17, 2  ;;  %p51_p5 = scmp.ne.s32.totalorder %s567_s7, %s563_s6 }
   0xe   : > { %p52_p6 = scmp.eq.s32.totalorder %s367_s14, 0  ;;  %p77_p7 = scmp.eq.s32.totalorder %s367_s14, 3 }
   0xf   : > { %s781_s17 = smov (%p31_p4, %s779_s17), 0  ;;  %p83_p10 = scmp.eq.s32.totalorder %s368_s15, 3 }
  0x10   : > { %p670_p8 = por %p52_p6, %p51_p5  ;;  %p674_p9 = por %p77_p7, %p45_p1 }
  0x11   : > { %s33_s23 = ssub.s32 %s587_s12, %s781_s17  ;;  %p680_p12 = por %p83_p10, %p51_p5 }
  0x12   : > { %s35_s24 = sor.u32 %s34_s19, %s33_s23  ;;  %p397_p13 = scmp.lt.s32.totalorder %s591_s13, 4 }
  0x13   : > { %p36_p11 = scmp.eq.s32.totalorder %s35_s24, 0  ;;  %s103_s26 = sand.u32 1, %s571_s8  }
  0x14   : > { %s371_s28 = sshll.u32 %s103_s26, 5  ;;  %s382_s29 = sshll.u32 %s583_s11, 2 }
  0x15   : > { %s687_s27 = scalar_select %p36_p11, %s571_s8, %s38_s18  }
  0x16   : > { %s374_s30 = sshll.u32 %s587_s12, 3  ;;  %s107_s2 = scalar_lea.vmem [#allocation2], %s371_s28 }
  0x17   : > { %s117_s3 = sshll.u32 %s107_s2, 4  ;;  %s114_s4 = sadd.s32 %s382_s29, %s374_s30  ;;  %s118_s3 = int_to_ptr.vmem [resolvable:$true] %s117_s3 }
  0x18   : > { %s375_s5 = sshll.u32 %s114_s4, 7  ;;  %p693_p0 = pnand %p397_p13, %p662_p3 }
  0x19   : > { %s116_s23 = scalar_lea.hbm %s762_s0, %s375_s5  ;;  %s104_s18 = scalar_lea.sflag [#allocation3], %s103_s26 }
  0x1a   : > { %p469_p1 = pneg %p693_p0  ;;  %s480_s24 = scalar_lea.vmem %s118_s3, 512 }
  0x1b   : > { %p481_p2 = scmp.ne.s32.totalorder %s118_s3, %s480_s24  ;;  %s593_s28 = smov [#allocation2]  }
  0x1c   : > { %s485_s29 = sshll.u32 %s593_s28, 4  ;;  %s486_s29 = int_to_ptr.vmem [resolvable:$false] %s485_s29 }
  0x1d   : > { %p483_p4 = pnand %p481_p2, %p469_p1  ;;  %s487_s20 = scalar_lea.vmem %s486_s29, 1024 }
  0x1e   : > { %p488_p3 = scmp.lt.s32.totalorder %s118_s3, %s486_s29  ;;  %p489_p6 = scmp.lt.s32.totalorder %s487_s20, %s480_s24 }
  0x1f   : > { %p484_p5 = pneg %p483_p4 }
  0x20   : > { %p490_p7 = por %p489_p6, %p488_p3 }
  0x22   : > { %p491_p10 = pnand %p490_p7, %p484_p5 }
  0x24   : > { %494 = shalt.err (!%p491_p10)
}
  0x25   : > { %s594_s30 = smov 128   ;;  %s595_s26 = smov 8  }
  0x26   : > { %392 = dma.hbm_to_vmem [thread:$0]  (!%p693_p0), %s116_s23, 512, %s118_s3, %s104_s18, %s594_s30, %s594_s30, %s595_s26  }
  0x27   : > { %p376_p11 = scmp.ge.s32.totalorder %s591_s13, 1  ;;  %p125_p13 = scmp.lt.s32.totalorder %s591_s13, 5 }
  0x29   : > { %p126_p1 = pnand %p376_p11, %p125_p13 }
  0x2a   : > { %s707_s2 = sand.u32 (!%p126_p1), 1, %s567_s7  }
  0x2b   : > { %129 = sbr.rel (%p126_p1) target bundleno = 514 (0x202), region = 24  ;;  %s377_s4 = sshll.u32 (!%p126_p1), %s707_s2, 5 }
  0x2c   : > { %s132_s5 = scalar_lea.sflag (!%p126_p1), [#allocation3], %s707_s2  ;;  %s135_s15 = scalar_lea.vmem (!%p126_p1), [#allocation2], %s377_s4 }
  0x30   : > { %554 = dma.done.wait (%p670_p8), %s132_s5, 512  }
  0x31   : > { %556 = vsyncadd (%p670_p8), %s132_s5, 4294966784  ;;  %v154_v0 = vld [vmem:[%s135_s15] sm:$0xff]  ;;  %v156_v1 = vld [vmem:[%s135_s15 + $0x10] sm:$0xff]  ;;  %s596_s3 = smov 1   ;;  %s597_s21 = smov 127   ;;  %vm243_vm0 = vcmask 121856  }
  0x32   : > { %207 = vrot.lane.b32.xlu0 %v154_v0, %s596_s3  ;;  %211 = vrot.lane.b32.xlu1 %v156_v1, %s596_s3  ;;  %v155_v2 = vld [vmem:[%s135_s15 + $0x8] sm:$0xff]  ;;  %v157_v3 = vld [vmem:[%s135_s15 + $0x18] sm:$0xff]  ;;  %v163_v29 = vrot.slane %v154_v0, 7  ;;  %v166_v30 = vrot.slane %v156_v1, 7  ;;  %vm162_vm1 = vcmask 1040384   ;;  %vm181_vm2 = vcmask 130049  }
  0x33   : > { %v164_v31 = vrot.slane %v155_v2, 7  ;;  %v167_v32 = vrot.slane %v157_v3, 7  ;;  %vm185_vm3 = vcmask 130048   ;;  %vm191_vm4 = vcmask 1046528   ;;  %s378_s14 = sshll.u32 %s579_s10, 1  ;;  %s152_s24 = scalar_lea.vmem [#allocation5], %s707_s2 }
  0x34   : > { %v173_v39 = vsub.f32 %v154_v0, %v163_v29  ;;  %v175_v40 = vsub.f32 %v156_v1, %v166_v30  ;;  %vm198_vm5 = vcmask 129024   ;;  %s281_s19 = sadd.s32 %s575_s9, %s378_s14  ;;  %s285_s28 = sshll.u32 %s152_s24, 4  ;;  %vm268_vm7 = vcmask 122880   ;;  %s286_s28 = int_to_ptr.vmem [resolvable:$true] %s285_s28 }
  0x35   : > { %v165_v35 = vsel %vm162_vm1, %v163_v29, %v164_v31  ;;  %v168_v36 = vsel %vm162_vm1, %v166_v30, %v167_v32  ;;  %s379_s18 = sshll.u32 %s281_s19, 4  ;;  %s271_s10 = scalar_lea.sflag [#allocation4], %s707_s2 }
  0x36   : > { %209 = vrot.lane.b32.xlu0 %v155_v2, %s596_s3  ;;  %213 = vrot.lane.b32.xlu1 %v157_v3, %s596_s3  ;;  %v174_v41 = vsub.f32 %v155_v2, %v165_v35  ;;  %v176_v42 = vsub.f32 %v157_v3, %v168_v36  ;;  %v177_v44 = vmul.f32 %v173_v39, %v173_v39  ;;  %s283_s30 = scalar_lea.hbm %s763_s1, %s379_s18  ;;  %s495_s26 = scalar_lea.vmem %s286_s28, 16 }
  0x37   : > { %v179_v45 = vmul.f32 %v175_v40, %v175_v40  ;;  %p496_p8 = scmp.ne.s32.totalorder %s286_s28, %s495_s26  ;;  %s598_s9 = smov [#allocation5]  }
  0x38   : > { %v178_v46 = vmul.f32 %v174_v41, %v174_v41  ;;  %v180_v47 = vmul.f32 %v176_v42, %v176_v42  ;;  %v182_v48 = vsel %vm181_vm2, %v177_v44, 0.0  ;;  %s499_s4 = sshll.u32 %s598_s9, 4  ;;  %s500_s4 = int_to_ptr.vmem [resolvable:$false] %s499_s4 }
  0x39   : > { %v183_v49 = vsel %vm181_vm2, %v179_v45, 0.0  ;;  %p497_p0 = pnand %p496_p8, %p674_p9  ;;  %s501_s5 = scalar_lea.vmem %s500_s4, 32 }
  0x3a   : > { %v186_v50 = vsel %vm185_vm3, %v178_v46, 0.0  ;;  %v187_v51 = vsel %vm185_vm3, %v180_v47, 0.0  ;;  %v184_v52 = vadd.f32 %v183_v49, %v182_v48  ;;  %p502_p4 = scmp.lt.s32.totalorder %s286_s28, %s500_s4  ;;  %p503_p5 = scmp.lt.s32.totalorder %s501_s5, %s495_s26 }
  0x3b   : > { %v188_v53 = vadd.f32 %v187_v51, %v186_v50  ;;  %p498_p2 = pneg %p497_p0 }
  0x3c   : > { %v192_v54 = vrot.slane %v184_v52, 1  ;;  %p504_p3 = por %p503_p5, %p502_p4 }
  0x3d   : > { %v193_v55 = vrot.slane %v188_v53, 1 }
  0x3e   : > { %p505_p6 = pnand %p504_p3, %p498_p2 }
  0x3f   : > { %v194_v56 = vsel %vm191_vm4, %v192_v54, %v193_v55  ;;  %v199_v58 = vsel %vm198_vm5, %v193_v55, 0.0 }
  0x40   : > { %v197_v57 = vsel %vm185_vm3, %v194_v56, 0.0 }
  0x41   : > { %v200_v59 = vadd.f32 %v199_v58, %v197_v57 }
  0x43   : > { %v201_v60 = vrot.slane %v200_v59, 4 }
  0x45   : > { %v202_v61 = vadd.f32 %v201_v60, %v200_v59 }
  0x47   : > { %v203_v62 = vrot.slane %v202_v61, 2 }
  0x49   : > { %v204_v63 = vadd.f32 %v203_v62, %v202_v61 }
  0xa4   : > { %v208_v4 = vpop.permute.xlu0 %207  ;;  %v212_v5 = vpop.permute.xlu1 %211 }
  0xa5   : > { %v219_v6 = vsub.f32 %v154_v0, %v208_v4  ;;  %v221_v7 = vsub.f32 %v156_v1, %v212_v5  ;;  %v260_v0 = vlaneseq  ;;  %v205_v1 = vrot.slane %v204_v63, 1 }
  0xa7   : > { %v223_v8 = vmul.f32 %v219_v6, %v219_v6  ;;  %v225_v11 = vmul.f32 %v221_v7, %v221_v7 }
  0xa8   : > { %v210_v9 = vpop.permute.xlu0 %209  ;;  %v214_v10 = vpop.permute.xlu1 %213 }
  0xa9   : > { %v220_v12 = vsub.f32 %v155_v2, %v210_v9  ;;  %231 = vrot.lane.b32.xlu0 %v223_v8, %s597_s21  ;;  %v222_v13 = vsub.f32 %v157_v3, %v214_v10  ;;  %v261_v2 = vand.u32 127, %v260_v0  ;;  %v206_v3 = vadd.f32 %v205_v1, %v204_v63 }
  0xab   : > { %v224_v14 = vmul.f32 %v220_v12, %v220_v12  ;;  %v226_v15 = vmul.f32 %v222_v13, %v222_v13  ;;  %vm262_vm6 = vcmp.eq.s32.totalorder %v261_v2, 0  ;;  %v265_v5 = vmul.f32 0.0010416667, %v206_v3 }
  0xad   : > { %235 = vrot.lane.b32.xlu0 %v225_v11, %s597_s21  ;;  %233 = vrot.lane.b32.xlu1 %v224_v14, %s597_s21 }
  0xb1   : > { %237 = vrot.lane.b32.xlu1 %v226_v15, %s597_s21 }
 0x11b   : > { %v232_v16 = vpop.permute.xlu0 %231 }
 0x11c   : > { %v244_v19 = vsel %vm243_vm0, %v232_v16, 0.0 }
 0x11f   : > { %v234_v17 = vpop.permute.xlu1 %233  ;;  %v236_v18 = vpop.permute.xlu0 %235 }
 0x120   : > { %v245_v20 = vsel %vm243_vm0, %v234_v17, 0.0  ;;  %v247_v22 = vsel %vm243_vm0, %v236_v18, 0.0 }
 0x121   : > { %v246_v21 = vadd.f32 %v245_v20, %v244_v19 }
 0x123   : > { %v248_v23 = vadd.f32 %v247_v22, %v246_v21  ;;  %v238_v24 = vpop.permute.xlu1 %237 }
 0x124   : > { %v249_v25 = vsel %vm243_vm0, %v238_v24, 0.0 }
 0x125   : > { %v250_v26 = vadd.f32 %v249_v25, %v248_v23 }
 0x127   : > { %251 = vadd.xlane.f32.xlu0 %v250_v26 }
 0x1b0   : > { %v252_v27 = vpop.xlane.xlu0 %251 }
 0x1b1   : > { %v253_v28 = vrot.slane %v252_v27, 4 }
 0x1b3   : > { %v254_v33 = vadd.f32 %v253_v28, %v252_v27 }
 0x1b5   : > { %v255_v34 = vrot.slane %v254_v33, 2 }
 0x1b7   : > { %v256_v37 = vadd.f32 %v255_v34, %v254_v33 }
 0x1b9   : > { %v257_v38 = vrot.slane %v256_v37, 1 }
 0x1bb   : > { %v258_v43 = vadd.f32 %v257_v38, %v256_v37 }
 0x1bd   : > { %383 = vpush %v258_v43 }
 0x1ee   : > { %s384_s23 = spop %383 }
 0x1ef   : > { %v263_v4 = vstv %s384_s23 }
 0x1f0   : > { %v264_v6 = vsel %vm262_vm6, %v263_v4, 0.0 }
 0x1f1   : > { %v266_v7 = vmul.f32 0.0010416667, %v264_v6 }
 0x1f3   : > { %v267_v8 = vadd.f32 %v266_v7, %v265_v5 }
 0x1f5   : > { %269 = vst.msk [vmem:[%s152_s24] sm:$0x1] %vm268_vm7, %v267_v8 }
 0x1f6   : > { %508 = shalt.err (!%p505_p6)
}
 0x1f7   : > { %s509_s15 = scalar_lea.hbm %s283_s30, 16  ;;  %s513_s21 = scalar_lea.hbm %s763_s1, 64 }
 0x1f8   : > { %p510_p7 = scmp.ne.s32.totalorder %s283_s30, %s509_s15  ;;  %p514_p13 = scmp.lt.s32.totalorder %s283_s30, %s763_s1 }
 0x1f9   : > { %p515_p1 = scmp.lt.s32.totalorder %s513_s21, %s509_s15 }
 0x1fa   : > { %p511_p10 = pnand %p510_p7, %p674_p9 }
 0x1fb   : > { %p516_p8 = por %p515_p1, %p514_p13 }
 0x1fc   : > { %p512_p11 = pneg %p511_p10 }
 0x1fe   : > { %p517_p0 = pnand %p516_p8, %p512_p11 }
 0x200   : > { %520 = shalt.err (!%p517_p0)
}
 0x201   : > { %387 = dma.vmem_to_hbm [thread:$0]  (%p674_p9), %s286_s28, 16, %s283_s30, %s271_s10  }
 0x202 PF: > { %p398_p2 = scmp.ge.s32.totalorder %s591_s13, 2  ;;  %s297_s23 = sand.u32 1, %s563_s6  }
 0x203   : > { %s298_s18 = scalar_lea.sflag [#allocation4], %s297_s23 }
 0x204   : > { %p394_p4 = pnand %p398_p2, %p680_p12 }
 0x206   : > { %p395_p5 = pneg %p394_p4 }
 0x208   : > { %558 = dma.done.wait (%p395_p5), %s298_s18, 16  }
 0x209   : > { %560 = vsyncadd (%p395_p5), %s298_s18, 4294967280  ;;  %s17_s13 = sadd.s32 1, %s591_s13   ;;  %s769_s6 = smov %s567_s7 }
 0x20a   : > { %p14_p3 = scmp.ge.s32.totalorder %s17_s13, 6   ;;  %s770_s7 = smov %s571_s8 }
 0x20b   : > { %s771_s8 = smov %s687_s27  ;;  %s772_s9 = smov %s583_s11 }
 0x20c   : > { %s773_s10 = smov %s587_s12  ;;  %s774_s11 = smov %s777_s16 }
 0x20d   : > { %s775_s12 = smov %s781_s17  ;;  %16 = sbr.rel (!%p14_p3) target bundleno = 7 (0x7), region = 69 }
 0x212   :  { %302 = vsyncpa [#allocation3], 1 }
 0x213   :  { %304 = vsyncpa [#allocation3 + $0x1], 1 }
 0x214   :  { %305 = vsyncpa [#allocation4], 1 }
 0x215   :  { %307 = vsyncpa [#allocation4 + $0x1], 1 }

</bundles_post_ra>
